<compile_context>
chip_gen: v7x
topology: tpu7x:2x2x1
jax: 0.10.0
libtpu: 0.0.40
codegen_flags: <defaults>
</compile_context>

<pallas_src>
import jax
import jax.numpy as jnp
from jax import lax
from jax.experimental import pallas as pl
from jax.experimental.pallas import tpu as pltpu


def _round_up(x, m):
    return -(-x // m) * m


def _weight_norm(v, g):
    """PyTorch weight_norm (dim=0): w = g * v / ||v|| over (in, k) per out ch."""
    norm = jnp.sqrt(jnp.sum(v * v, axis=(1, 2), keepdims=True))
    return g.reshape(-1, 1, 1) * v / norm


def _make_kernel(K, d, pad, l_tile, bn, c_in_p, c_mid, c_out, has_downsample, dt):
    """Fused residual-block kernel: one (batch_block, L_tile) slab per step."""
    Lt = l_tile

    def _im2col(slab):
        # (C, pad+Lt) -> (K*C, Lt): stack the K dilated shifted views on sublanes.
        return jnp.concatenate([slab[:, k * d:k * d + Lt] for k in range(K)], axis=0)

    def kernel(x_ref, w1_ref, b1_ref, w2_ref, b2_ref, out_ref, xbuf, h1buf):
        # x_ref  : (bn, Cin_p, Lt)      input slab (NCL, channel-padded to 8)
        # w1_ref : (Cmid[+Cout], K*Cin_p) im2col conv1 weight (+fused 1x1 rows)
        # w2_ref : (Cout, K*Cmid)       im2col conv2 weight
        # b*_ref : (R, 1)               f32 biases (b1_ref includes bd rows)
        # out_ref: (bn, Cout, Lt)
        # xbuf   : (bn, Cin_p, pad+Lt)  persistent scratch: [causal halo | x tile]
        # h1buf  : (bn, Cmid,  pad+Lt)  persistent scratch: [causal halo | h1 tile]
        lt = pl.program_id(1)

        if pad > 0:
            @pl.when(lt == 0)          # first L tile of this batch block: zero halo
            def _init():
                xbuf[:, :, :pad] = jnp.zeros((bn, c_in_p, pad), dt)
                h1buf[:, :, :pad] = jnp.zeros((bn, c_mid, pad), dt)

            @pl.when(lt > 0)           # carry last `pad` columns of previous tile
            def _carry():
                xbuf[:, :, :pad] = xbuf[:, :, Lt:Lt + pad]
                h1buf[:, :, :pad] = h1buf[:, :, Lt:Lt + pad]

        xbuf[:, :, pad:] = x_ref[...]  # new tile at lane offset `pad`

        w1 = w1_ref[...]
        b1 = b1_ref[...]
        w2 = w2_ref[...]
        b2 = b2_ref[...]

        for n in range(bn):            # static unroll; bn is small
            # ---- conv1 (+ fused 1x1 downsample rows): one MXU matmul ----
            xcol = _im2col(xbuf[n])                           # (K*Cin_p, Lt)
            pre = jnp.dot(w1, xcol,
                          preferred_element_type=jnp.float32) + b1
            h1 = jnp.maximum(pre[:c_mid], 0.0)                # ReLU (Dropout=eval id)
            if has_downsample:
                res = pre[c_mid:]                             # wd @ x + bd (no ReLU)
            else:
                res = x_ref[n, :c_out, :].astype(jnp.float32)  # identity residual

            # ---- conv2 ----
            h1buf[n, :, pad:] = h1.astype(dt)
            h1col = _im2col(h1buf[n])                         # (K*Cmid, Lt)
            h2 = jnp.maximum(
                jnp.dot(w2, h1col, preferred_element_type=jnp.float32) + b2, 0.0)

            out_ref[n] = jnp.maximum(h2 + res, 0.0)

    return kernel


def _choose_l_tile(L, pad):
    if L <= 512 or L % 128 != 0:
        return L
    for t in (512, 384, 256, 128):
        if L % t == 0 and t >= pad:
            return t
    return L


def residual_block_forward(x_ncl, params, kernel_size, dilation, *,
                           compute_dtype=jnp.float32, l_tile=None,
                           batch_block=None, vmem_limit_bytes=None):
    """Pallas forward.  x_ncl: (N, Cin, L) float32 -> (N, Cout, L) float32."""
    N, c_in, L = x_ncl.shape
    K = kernel_size
    pad = (K - 1) * dilation
    dt = jnp.dtype(compute_dtype)

    # ---- parameter glue: weight-norm reparam + im2col flattening (f32) ----
    w1 = _weight_norm(params["v1"].astype(jnp.float32),
                      params["g1"].astype(jnp.float32))        # (Cmid, Cin, K)
    w2 = _weight_norm(params["v2"].astype(jnp.float32),
                      params["g2"].astype(jnp.float32))        # (Cout, Cmid, K)
    c_mid, c_out = w1.shape[0], w2.shape[0]
    has_downsample = (c_in != c_out)

    # Sublane-align the channel blocks used in the im2col concat (8 for f32).
    # TODO(synk): round to 16 when compute_dtype is bf16 at real widths.
    c_in_p = _round_up(c_in, 8)

    w1p = jnp.pad(w1, ((0, 0), (0, c_in_p - c_in), (0, 0)))
    w1_mat = jnp.transpose(w1p, (0, 2, 1)).reshape(c_mid, K * c_in_p)
    w2_mat = jnp.transpose(w2, (0, 2, 1)).reshape(c_out, K * c_mid)
    b1 = params["b1"].astype(jnp.float32).reshape(c_mid, 1)
    b2 = params["b2"].astype(jnp.float32).reshape(c_out, 1)

    if has_downsample:
        # Fuse the 1x1 residual conv into conv1: extra rows, non-zero only in
        # the tap-(K-1) column block (which is exactly the unshifted x).
        wd = params["wd"][:, :, 0].astype(jnp.float32)         # (Cout, Cin)
        wd_rows = jnp.zeros((c_out, K, c_in_p), jnp.float32)
        wd_rows = wd_rows.at[:, K - 1, :c_in].set(wd)
        w1_aug = jnp.concatenate(
            [w1_mat, wd_rows.reshape(c_out, K * c_in_p)], axis=0)
        b1d = jnp.concatenate(
            [b1, params["bd"].astype(jnp.float32).reshape(c_out, 1)], axis=0)
    else:
        w1_aug, b1d = w1_mat, b1
    r1 = w1_aug.shape[0]

    # ---- tiling ----
    Lt = l_tile if l_tile is not None else _choose_l_tile(L, pad)
    assert L % Lt == 0 and (Lt == L or Lt % 128 == 0), (L, Lt)
    if L // Lt > 1:
        assert Lt >= pad, "L tile must cover the causal receptive field"
    bn = batch_block if batch_block is not None else (N if N <= 8 else 1)
    assert N % bn == 0, (N, bn)

    x_p = jnp.pad(x_ncl.astype(jnp.float32),
                  ((0, 0), (0, c_in_p - c_in), (0, 0))).astype(dt)

    kernel = _make_kernel(K, dilation, pad, Lt, bn, c_in_p, c_mid, c_out,
                          has_downsample, dt)

    grid = (N // bn, L // Lt)
    in_specs = [
        pl.BlockSpec((bn, c_in_p, Lt), lambda b, l: (b, 0, l)),
        pl.BlockSpec((r1, K * c_in_p), lambda b, l: (0, 0)),
        pl.BlockSpec((r1, 1), lambda b, l: (0, 0)),
        pl.BlockSpec((c_out, K * c_mid), lambda b, l: (0, 0)),
        pl.BlockSpec((c_out, 1), lambda b, l: (0, 0)),
    ]
    out_specs = pl.BlockSpec((bn, c_out, Lt), lambda b, l: (b, 0, l))
    scratch_shapes = [pltpu.VMEM((bn, c_in_p, pad + Lt), dt),
                      pltpu.VMEM((bn, c_mid, pad + Lt), dt)]

    flops = 2 * N * L * (r1 * K * c_in_p + c_out * K * c_mid)
    bytes_accessed = int(x_p.size * x_p.dtype.itemsize + N * c_out * L * 4 +
                         (w1_aug.size + w2_mat.size) * dt.itemsize +
                         (r1 + c_out) * 4)
    cost = pl.CostEstimate(flops=flops, transcendentals=0,
                           bytes_accessed=bytes_accessed)

    if vmem_limit_bytes is None:
        est = (2 * bn * (c_in_p + c_out) * Lt * max(dt.itemsize, 4)
               + bn * (c_in_p + c_mid) * (pad + Lt) * dt.itemsize
               + (w1_aug.size + w2_mat.size) * dt.itemsize
               + 4 * bn * K * max(c_in_p, c_mid) * Lt * dt.itemsize)
        if est > 30 * 1024 * 1024:
            vmem_limit_bytes = int(est * 3 // 2)

    return pl.pallas_call(
        kernel,
        out_shape=jax.ShapeDtypeStruct((N, c_out, L), jnp.float32),
        grid_spec=pltpu.PrefetchScalarGridSpec(
            num_scalar_prefetch=0, grid=grid,
            in_specs=in_specs, out_specs=out_specs,
            scratch_shapes=scratch_shapes),
        compiler_params=pltpu.CompilerParams(
            dimension_semantics=("parallel", "arbitrary"),
            vmem_limit_bytes=vmem_limit_bytes),
        cost_estimate=cost,
    )(x_p, w1_aug.astype(dt), b1d, w2_mat.astype(dt), b2)


# ---------------------------- pure-JAX reference ----------------------------
def _causal_conv_ref(x_ncl, w, b, dilation, pad):
    y = lax.conv_general_dilated(
        x_ncl, w, window_strides=(1,), padding=[(pad, 0)],
        rhs_dilation=(dilation,), dimension_numbers=("NCH", "OIH", "NCH"))
    return y + b[None, :, None]


def residual_block_reference(x_ncl, params, kernel_size, dilation):
    pad = (kernel_size - 1) * dilation
    w1 = _weight_norm(params["v1"], params["g1"])
    w2 = _weight_norm(params["v2"], params["g2"])
    h1 = jnp.maximum(_causal_conv_ref(x_ncl, w1, params["b1"], dilation, pad), 0.0)
    h2 = jnp.maximum(_causal_conv_ref(h1, w2, params["b2"], dilation, pad), 0.0)
    c_in, c_out = x_ncl.shape[1], w2.shape[0]
    if c_in != c_out:
        res = lax.conv_general_dilated(
            x_ncl, params["wd"], window_strides=(1,), padding=[(0, 0)],
            dimension_numbers=("NCH", "OIH", "NCH")) + params["bd"][None, :, None]
    else:
        res = x_ncl
    return jnp.maximum(h2 + res, 0.0)


# --------------------------------- driver -----------------------------------
def _make_params(key, c_in, channels, K):
    keys = jax.random.split(key, 8)
    p = {
        "v1": jax.random.normal(keys[0], (channels, c_in, K), jnp.float32),
        "g1": jax.random.uniform(keys[1], (channels,), jnp.float32, 0.5, 1.5),
        "b1": jax.random.normal(keys[2], (channels,), jnp.float32) * 0.1,
        "v2": jax.random.normal(keys[3], (channels, channels, K), jnp.float32),
        "g2": jax.random.uniform(keys[4], (channels,), jnp.float32, 0.5, 1.5),
        "b2": jax.random.normal(keys[5], (channels,), jnp.float32) * 0.1,
    }
    if c_in != channels:
        p["wd"] = jax.random.normal(keys[6], (channels, c_in, 1), jnp.float32)
        p["bd"] = jax.random.normal(keys[7], (channels,), jnp.float32) * 0.1
    return p


if __name__ == "__main__":
    # TODO(synk): training-mode Dropout (stochastic masking) is not modeled;
    # eval-mode forward only (Dropout == identity).
    key = jax.random.PRNGKey(0)
    k1, k2, k3, kx1, kx2, kx3 = jax.random.split(key, 6)

    # 1) small, downsample path (in_channels != channels), f32 matmuls
    N, C_IN, CHANNELS, KSIZE, DIL, L = 2, 4, 8, 3, 2, 16
    params = _make_params(k1, C_IN, CHANNELS, KSIZE)
    x = jax.random.normal(kx1, (N, C_IN, L), jnp.float32)
    out = jax.block_until_ready(residual_block_forward(x, params, KSIZE, DIL))
    ref = residual_block_reference(x, params, KSIZE, DIL)
    assert out.shape == (N, CHANNELS, L), out.shape
    assert jnp.allclose(out, ref, atol=1e-4, rtol=1e-4), (
        float(jnp.max(jnp.abs(out - ref))))

    # 2) small, identity-residual path (in_channels == channels), f32 matmuls
    params2 = _make_params(k2, CHANNELS, CHANNELS, KSIZE)
    x2 = jax.random.normal(kx2, (N, CHANNELS, L), jnp.float32)
    out2 = jax.block_until_ready(residual_block_forward(x2, params2, KSIZE, 1))
    ref2 = residual_block_reference(x2, params2, KSIZE, 1)
    assert jnp.allclose(out2, ref2, atol=1e-4, rtol=1e-4), (
        float(jnp.max(jnp.abs(out2 - ref2))))

    # 3) longer sequence: exercises the 128-lane L tiling with causal halo
    #    carry across tiles and bf16 MXU operands (f32 accumulation).
    N3, C3, CH3, K3, D3, L3 = 2, 8, 16, 3, 4, 512
    params3 = _make_params(k3, C3, CH3, K3)
    x3 = jax.random.normal(kx3, (N3, C3, L3), jnp.float32)
    out3 = jax.block_until_ready(
        residual_block_forward(x3, params3, K3, D3,
                               compute_dtype=jnp.bfloat16, l_tile=128))
    ref3 = residual_block_reference(x3, params3, K3, D3)
    assert out3.shape == (N3, CH3, L3), out3.shape
    assert jnp.allclose(out3, ref3, atol=7.5e-2, rtol=5e-2), (
        float(jnp.max(jnp.abs(out3 - ref3))))

    print("KERNEL_OK")
</pallas_src>

<mosaic_0001>
module attributes {stable_mosaic.version = 11 : i64} {
  func.func @kernel(%arg0: i32, %arg1: i32, %arg2: memref<2x8x16xf32, #tpu.memory_space<vmem>>, %arg3: memref<16x24xf32, #tpu.memory_space<vmem>>, %arg4: memref<16x1xf32, #tpu.memory_space<vmem>>, %arg5: memref<8x24xf32, #tpu.memory_space<vmem>>, %arg6: memref<8x1xf32, #tpu.memory_space<vmem>>, %arg7: memref<2x8x16xf32, #tpu.memory_space<vmem>>, %arg8: memref<2x8x20xf32, #tpu.memory_space<vmem>>, %arg9: memref<2x8x20xf32, #tpu.memory_space<vmem>>) attributes {dimension_semantics = [#tpu.dimension_semantics<parallel>, #tpu.dimension_semantics<arbitrary>], iteration_bounds = array<i64: 1, 1>, scalar_prefetch = 0 : i64, scratch_operands = 2 : i64, tpu.core_type = #tpu.core_type<tc>, window_params = [{transform_indices = @transform_0, window_bounds = array<i64: 2, 8, 16>}, {pipeline_mode = #tpu.pipeline_mode<synchronous>, transform_indices = @transform_1, window_bounds = array<i64: 16, 24>}, {pipeline_mode = #tpu.pipeline_mode<synchronous>, transform_indices = @transform_2, window_bounds = array<i64: 16, 1>}, {pipeline_mode = #tpu.pipeline_mode<synchronous>, transform_indices = @transform_3, window_bounds = array<i64: 8, 24>}, {pipeline_mode = #tpu.pipeline_mode<synchronous>, transform_indices = @transform_4, window_bounds = array<i64: 8, 1>}, {transform_indices = @transform_5, window_bounds = array<i64: 2, 8, 16>}]} {
    %c0_i32 = arith.constant 0 : i32
    %0 = arith.cmpi eq, %arg1, %c0_i32 : i32
    %1 = arith.extui %0 : i1 to i32
    %c0_i32_0 = arith.constant 0 : i32
    %2 = arith.cmpi ne, %1, %c0_i32_0 : i32
    scf.if %2 {
      %cst_47 = arith.constant 0.000000e+00 : f32
      %78 = vector.broadcast %cst_47 : f32 to vector<2x8x4xf32>
      %c0_48 = arith.constant 0 : index
      %c0_49 = arith.constant 0 : index
      %c0_50 = arith.constant 0 : index
      %79 = vector.load %arg8[%c0_48, %c0_49, %c0_50] : memref<2x8x20xf32, #tpu.memory_space<vmem>>, vector<2x8x4xf32>
      tpu.vector_store %arg8[%c0_48, %c0_49, %c0_50], %78 {strides = array<i32>} : memref<2x8x20xf32, #tpu.memory_space<vmem>>, vector<2x8x4xf32>,
      %cst_51 = arith.constant 0.000000e+00 : f32
      %80 = vector.broadcast %cst_51 : f32 to vector<2x8x4xf32>
      %c0_52 = arith.constant 0 : index
      %c0_53 = arith.constant 0 : index
      %c0_54 = arith.constant 0 : index
      %81 = vector.load %arg9[%c0_52, %c0_53, %c0_54] : memref<2x8x20xf32, #tpu.memory_space<vmem>>, vector<2x8x4xf32>
      tpu.vector_store %arg9[%c0_52, %c0_53, %c0_54], %80 {strides = array<i32>} : memref<2x8x20xf32, #tpu.memory_space<vmem>>, vector<2x8x4xf32>,
    } else {
    }
    %c0_i32_1 = arith.constant 0 : i32
    %3 = arith.cmpi sgt, %arg1, %c0_i32_1 : i32
    %4 = arith.extui %3 : i1 to i32
    %c0_i32_2 = arith.constant 0 : i32
    %5 = arith.cmpi ne, %4, %c0_i32_2 : i32
    scf.if %5 {
      %c0_47 = arith.constant 0 : index
      %c0_48 = arith.constant 0 : index
      %c16 = arith.constant 16 : index
      %78 = vector.load %arg8[%c0_47, %c0_48, %c16] : memref<2x8x20xf32, #tpu.memory_space<vmem>>, vector<2x8x4xf32>
      %c0_49 = arith.constant 0 : index
      %c0_50 = arith.constant 0 : index
      %c0_51 = arith.constant 0 : index
      %79 = vector.load %arg8[%c0_49, %c0_50, %c0_51] : memref<2x8x20xf32, #tpu.memory_space<vmem>>, vector<2x8x4xf32>
      tpu.vector_store %arg8[%c0_49, %c0_50, %c0_51], %78 {strides = array<i32>} : memref<2x8x20xf32, #tpu.memory_space<vmem>>, vector<2x8x4xf32>,
      %c0_52 = arith.constant 0 : index
      %c0_53 = arith.constant 0 : index
      %c16_54 = arith.constant 16 : index
      %80 = vector.load %arg9[%c0_52, %c0_53, %c16_54] : memref<2x8x20xf32, #tpu.memory_space<vmem>>, vector<2x8x4xf32>
      %c0_55 = arith.constant 0 : index
      %c0_56 = arith.constant 0 : index
      %c0_57 = arith.constant 0 : index
      %81 = vector.load %arg9[%c0_55, %c0_56, %c0_57] : memref<2x8x20xf32, #tpu.memory_space<vmem>>, vector<2x8x4xf32>
      tpu.vector_store %arg9[%c0_55, %c0_56, %c0_57], %80 {strides = array<i32>} : memref<2x8x20xf32, #tpu.memory_space<vmem>>, vector<2x8x4xf32>,
    } else {
    }
    %c0 = arith.constant 0 : index
    %c0_3 = arith.constant 0 : index
    %c0_4 = arith.constant 0 : index
    %6 = vector.load %arg2[%c0, %c0_3, %c0_4] : memref<2x8x16xf32, #tpu.memory_space<vmem>>, vector<2x8x16xf32>
    %c0_5 = arith.constant 0 : index
    %c0_6 = arith.constant 0 : index
    %c4 = arith.constant 4 : index
    %7 = vector.load %arg8[%c0_5, %c0_6, %c4] : memref<2x8x20xf32, #tpu.memory_space<vmem>>, vector<2x8x16xf32>
    tpu.vector_store %arg8[%c0_5, %c0_6, %c4], %6 {strides = array<i32>} : memref<2x8x20xf32, #tpu.memory_space<vmem>>, vector<2x8x16xf32>,
    %c0_7 = arith.constant 0 : index
    %c0_8 = arith.constant 0 : index
    %8 = vector.load %arg3[%c0_7, %c0_8] : memref<16x24xf32, #tpu.memory_space<vmem>>, vector<16x24xf32>
    %c0_9 = arith.constant 0 : index
    %c0_10 = arith.constant 0 : index
    %9 = vector.load %arg4[%c0_9, %c0_10] : memref<16x1xf32, #tpu.memory_space<vmem>>, vector<16x1xf32>
    %c0_11 = arith.constant 0 : index
    %c0_12 = arith.constant 0 : index
    %10 = vector.load %arg5[%c0_11, %c0_12] : memref<8x24xf32, #tpu.memory_space<vmem>>, vector<8x24xf32>
    %c0_13 = arith.constant 0 : index
    %c0_14 = arith.constant 0 : index
    %11 = vector.load %arg6[%c0_13, %c0_14] : memref<8x1xf32, #tpu.memory_space<vmem>>, vector<8x1xf32>
    %c0_15 = arith.constant 0 : index
    %c0_16 = arith.constant 0 : index
    %c0_17 = arith.constant 0 : index
    %12 = vector.load %arg8[%c0_15, %c0_16, %c0_17] : memref<2x8x20xf32, #tpu.memory_space<vmem>>, vector<1x8x20xf32>
    %13 = vector.shape_cast %12 : vector<1x8x20xf32> to vector<8x20xf32>
    %14 = vector.extract_strided_slice %13 {offsets = [0, 0], sizes = [8, 16], strides = [1, 1]} : vector<8x20xf32> to vector<8x16xf32>
    %15 = vector.extract_strided_slice %13 {offsets = [0, 2], sizes = [8, 16], strides = [1, 1]} : vector<8x20xf32> to vector<8x16xf32>
    %16 = vector.extract_strided_slice %13 {offsets = [0, 4], sizes = [8, 16], strides = [1, 1]} : vector<8x20xf32> to vector<8x16xf32>
    %17 = tpu.concatenate %14, %15, %16 in 0 : vector<8x16xf32>, vector<8x16xf32>, vector<8x16xf32> -> vector<24x16xf32>
    %cst = arith.constant dense<0.000000e+00> : vector<16x16xf32>
    %18 = tpu.matmul %8, %17, %cst {dimension_numbers = #tpu.dot_dimension_numbers<[1], [0], [0], [1], [0, 0, 1, 1], [], []>} : vector<16x24xf32>, vector<24x16xf32>, vector<16x16xf32> -> vector<16x16xf32>
    %19 = vector.broadcast %9 : vector<16x1xf32> to vector<16x16xf32>
    %20 = arith.addf %18, %19 : vector<16x16xf32>
    %21 = vector.extract_strided_slice %20 {offsets = [0, 0], sizes = [8, 16], strides = [1, 1]} : vector<16x16xf32> to vector<8x16xf32>
    %cst_18 = arith.constant 0.000000e+00 : f32
    %22 = vector.broadcast %cst_18 : f32 to vector<8x16xf32>
    %23 = arith.maximumf %21, %22 : vector<8x16xf32>
    %24 = vector.extract_strided_slice %20 {offsets = [8, 0], sizes = [8, 16], strides = [1, 1]} : vector<16x16xf32> to vector<8x16xf32>
    %c0_19 = arith.constant 0 : index
    %c0_20 = arith.constant 0 : index
    %c4_21 = arith.constant 4 : index
    %25 = vector.load %arg9[%c0_19, %c0_20, %c4_21] : memref<2x8x20xf32, #tpu.memory_space<vmem>>, vector<1x8x16xf32>
    %26 = vector.shape_cast %25 : vector<1x8x16xf32> to vector<8x16xf32>
    %27 = vector.shape_cast %23 : vector<8x16xf32> to vector<1x8x16xf32>
    tpu.vector_store %arg9[%c0_19, %c0_20, %c4_21], %27 {strides = array<i32>} : memref<2x8x20xf32, #tpu.memory_space<vmem>>, vector<1x8x16xf32>,
    %c0_22 = arith.constant 0 : index
    %c0_23 = arith.constant 0 : index
    %c0_24 = arith.constant 0 : index
    %28 = vector.load %arg9[%c0_22, %c0_23, %c0_24] : memref<2x8x20xf32, #tpu.memory_space<vmem>>, vector<1x8x20xf32>
    %29 = vector.shape_cast %28 : vector<1x8x20xf32> to vector<8x20xf32>
    %30 = vector.extract_strided_slice %29 {offsets = [0, 0], sizes = [8, 16], strides = [1, 1]} : vector<8x20xf32> to vector<8x16xf32>
    %31 = vector.extract_strided_slice %29 {offsets = [0, 2], sizes = [8, 16], strides = [1, 1]} : vector<8x20xf32> to vector<8x16xf32>
    %32 = vector.extract_strided_slice %29 {offsets = [0, 4], sizes = [8, 16], strides = [1, 1]} : vector<8x20xf32> to vector<8x16xf32>
    %33 = tpu.concatenate %30, %31, %32 in 0 : vector<8x16xf32>, vector<8x16xf32>, vector<8x16xf32> -> vector<24x16xf32>
    %cst_25 = arith.constant dense<0.000000e+00> : vector<8x16xf32>
    %34 = tpu.matmul %10, %33, %cst_25 {dimension_numbers = #tpu.dot_dimension_numbers<[1], [0], [0], [1], [0, 0, 1, 1], [], []>} : vector<8x24xf32>, vector<24x16xf32>, vector<8x16xf32> -> vector<8x16xf32>
    %35 = vector.broadcast %11 : vector<8x1xf32> to vector<8x16xf32>
    %36 = arith.addf %34, %35 : vector<8x16xf32>
    %cst_26 = arith.constant 0.000000e+00 : f32
    %37 = vector.broadcast %cst_26 : f32 to vector<8x16xf32>
    %38 = arith.maximumf %36, %37 : vector<8x16xf32>
    %39 = arith.addf %38, %24 : vector<8x16xf32>
    %cst_27 = arith.constant 0.000000e+00 : f32
    %40 = vector.broadcast %cst_27 : f32 to vector<8x16xf32>
    %41 = arith.maximumf %39, %40 : vector<8x16xf32>
    %c0_28 = arith.constant 0 : index
    %c0_29 = arith.constant 0 : index
    %c0_30 = arith.constant 0 : index
    %42 = vector.load %arg7[%c0_28, %c0_29, %c0_30] : memref<2x8x16xf32, #tpu.memory_space<vmem>>, vector<1x8x16xf32>
    %43 = vector.shape_cast %42 : vector<1x8x16xf32> to vector<8x16xf32>
    %44 = vector.shape_cast %41 : vector<8x16xf32> to vector<1x8x16xf32>
    tpu.vector_store %arg7[%c0_28, %c0_29, %c0_30], %44 {strides = array<i32>} : memref<2x8x16xf32, #tpu.memory_space<vmem>>, vector<1x8x16xf32>,
    %c1 = arith.constant 1 : index
    %c0_31 = arith.constant 0 : index
    %c0_32 = arith.constant 0 : index
    %45 = vector.load %arg8[%c1, %c0_31, %c0_32] : memref<2x8x20xf32, #tpu.memory_space<vmem>>, vector<1x8x20xf32>
    %46 = vector.shape_cast %45 : vector<1x8x20xf32> to vector<8x20xf32>
    %47 = vector.extract_strided_slice %46 {offsets = [0, 0], sizes = [8, 16], strides = [1, 1]} : vector<8x20xf32> to vector<8x16xf32>
    %48 = vector.extract_strided_slice %46 {offsets = [0, 2], sizes = [8, 16], strides = [1, 1]} : vector<8x20xf32> to vector<8x16xf32>
    %49 = vector.extract_strided_slice %46 {offsets = [0, 4], sizes = [8, 16], strides = [1, 1]} : vector<8x20xf32> to vector<8x16xf32>
    %50 = tpu.concatenate %47, %48, %49 in 0 : vector<8x16xf32>, vector<8x16xf32>, vector<8x16xf32> -> vector<24x16xf32>
    %cst_33 = arith.constant dense<0.000000e+00> : vector<16x16xf32>
    %51 = tpu.matmul %8, %50, %cst_33 {dimension_numbers = #tpu.dot_dimension_numbers<[1], [0], [0], [1], [0, 0, 1, 1], [], []>} : vector<16x24xf32>, vector<24x16xf32>, vector<16x16xf32> -> vector<16x16xf32>
    %52 = vector.broadcast %9 : vector<16x1xf32> to vector<16x16xf32>
    %53 = arith.addf %51, %52 : vector<16x16xf32>
    %54 = vector.extract_strided_slice %53 {offsets = [0, 0], sizes = [8, 16], strides = [1, 1]} : vector<16x16xf32> to vector<8x16xf32>
    %cst_34 = arith.constant 0.000000e+00 : f32
    %55 = vector.broadcast %cst_34 : f32 to vector<8x16xf32>
    %56 = arith.maximumf %54, %55 : vector<8x16xf32>
    %57 = vector.extract_strided_slice %53 {offsets = [8, 0], sizes = [8, 16], strides = [1, 1]} : vector<16x16xf32> to vector<8x16xf32>
    %c1_35 = arith.constant 1 : index
    %c0_36 = arith.constant 0 : index
    %c4_37 = arith.constant 4 : index
    %58 = vector.load %arg9[%c1_35, %c0_36, %c4_37] : memref<2x8x20xf32, #tpu.memory_space<vmem>>, vector<1x8x16xf32>
    %59 = vector.shape_cast %58 : vector<1x8x16xf32> to vector<8x16xf32>
    %60 = vector.shape_cast %56 : vector<8x16xf32> to vector<1x8x16xf32>
    tpu.vector_store %arg9[%c1_35, %c0_36, %c4_37], %60 {strides = array<i32>} : memref<2x8x20xf32, #tpu.memory_space<vmem>>, vector<1x8x16xf32>,
    %c1_38 = arith.constant 1 : index
    %c0_39 = arith.constant 0 : index
    %c0_40 = arith.constant 0 : index
    %61 = vector.load %arg9[%c1_38, %c0_39, %c0_40] : memref<2x8x20xf32, #tpu.memory_space<vmem>>, vector<1x8x20xf32>
    %62 = vector.shape_cast %61 : vector<1x8x20xf32> to vector<8x20xf32>
    %63 = vector.extract_strided_slice %62 {offsets = [0, 0], sizes = [8, 16], strides = [1, 1]} : vector<8x20xf32> to vector<8x16xf32>
    %64 = vector.extract_strided_slice %62 {offsets = [0, 2], sizes = [8, 16], strides = [1, 1]} : vector<8x20xf32> to vector<8x16xf32>
    %65 = vector.extract_strided_slice %62 {offsets = [0, 4], sizes = [8, 16], strides = [1, 1]} : vector<8x20xf32> to vector<8x16xf32>
    %66 = tpu.concatenate %63, %64, %65 in 0 : vector<8x16xf32>, vector<8x16xf32>, vector<8x16xf32> -> vector<24x16xf32>
    %cst_41 = arith.constant dense<0.000000e+00> : vector<8x16xf32>
    %67 = tpu.matmul %10, %66, %cst_41 {dimension_numbers = #tpu.dot_dimension_numbers<[1], [0], [0], [1], [0, 0, 1, 1], [], []>} : vector<8x24xf32>, vector<24x16xf32>, vector<8x16xf32> -> vector<8x16xf32>
    %68 = vector.broadcast %11 : vector<8x1xf32> to vector<8x16xf32>
    %69 = arith.addf %67, %68 : vector<8x16xf32>
    %cst_42 = arith.constant 0.000000e+00 : f32
    %70 = vector.broadcast %cst_42 : f32 to vector<8x16xf32>
    %71 = arith.maximumf %69, %70 : vector<8x16xf32>
    %72 = arith.addf %71, %57 : vector<8x16xf32>
    %cst_43 = arith.constant 0.000000e+00 : f32
    %73 = vector.broadcast %cst_43 : f32 to vector<8x16xf32>
    %74 = arith.maximumf %72, %73 : vector<8x16xf32>
    %c1_44 = arith.constant 1 : index
    %c0_45 = arith.constant 0 : index
    %c0_46 = arith.constant 0 : index
    %75 = vector.load %arg7[%c1_44, %c0_45, %c0_46] : memref<2x8x16xf32, #tpu.memory_space<vmem>>, vector<1x8x16xf32>
    %76 = vector.shape_cast %75 : vector<1x8x16xf32> to vector<8x16xf32>
    %77 = vector.shape_cast %74 : vector<8x16xf32> to vector<1x8x16xf32>
    tpu.vector_store %arg7[%c1_44, %c0_45, %c0_46], %77 {strides = array<i32>} : memref<2x8x16xf32, #tpu.memory_space<vmem>>, vector<1x8x16xf32>,
    return
  }
  func.func @transform_0(%arg0: i32, %arg1: i32) -> (i32, i32, i32) {
    %c0_i32 = arith.constant 0 : i32
    %c0_i32_0 = arith.constant 0 : i32
    return %arg0, %c0_i32, %arg1 : i32, i32, i32
  }
  func.func @transform_1(%arg0: i32, %arg1: i32) -> (i32, i32) {
    %c0_i32 = arith.constant 0 : i32
    %c0_i32_0 = arith.constant 0 : i32
    %c0_i32_1 = arith.constant 0 : i32
    return %c0_i32, %c0_i32_0 : i32, i32
  }
  func.func @transform_2(%arg0: i32, %arg1: i32) -> (i32, i32) {
    %c0_i32 = arith.constant 0 : i32
    %c0_i32_0 = arith.constant 0 : i32
    %c0_i32_1 = arith.constant 0 : i32
    return %c0_i32, %c0_i32_0 : i32, i32
  }
  func.func @transform_3(%arg0: i32, %arg1: i32) -> (i32, i32) {
    %c0_i32 = arith.constant 0 : i32
    %c0_i32_0 = arith.constant 0 : i32
    %c0_i32_1 = arith.constant 0 : i32
    return %c0_i32, %c0_i32_0 : i32, i32
  }
  func.func @transform_4(%arg0: i32, %arg1: i32) -> (i32, i32) {
    %c0_i32 = arith.constant 0 : i32
    %c0_i32_0 = arith.constant 0 : i32
    %c0_i32_1 = arith.constant 0 : i32
    return %c0_i32, %c0_i32_0 : i32, i32
  }
  func.func @transform_5(%arg0: i32, %arg1: i32) -> (i32, i32, i32) {
    %c0_i32 = arith.constant 0 : i32
    %c0_i32_0 = arith.constant 0 : i32
    return %arg0, %c0_i32, %arg1 : i32, i32, i32
  }
}

</mosaic_0001>

<bundles_post_ra>
// kernel: tpu_custom_call.1
= control target key start
LH: loop header
LB: loop body
LE: loop exit
PB: predicated region body
PF: predicated region fallthrough
CT: control target
= control target key end

     0   :  { %10 = vsyncpa [#allocation5], 0  ;;  %s736_s0 = inlined_call_operand.vmem [shape: f32[2,8,16], index: 0, kind: input, shape index: {}]   ;;  %s737_s1 = inlined_call_operand.hbm [shape: f32[16,24], index: 1, kind: input, shape index: {}]   ;;  %s738_s2 = inlined_call_operand.vmem [shape: f32[16,1], index: 2, kind: input, shape index: {}]   ;;  %s739_s3 = inlined_call_operand.vmem [shape: f32[8,24], index: 3, kind: input, shape index: {}]   ;;  %s740_s4 = inlined_call_operand.vmem [shape: f32[8,1], index: 4, kind: input, shape index: {}]   ;;  %s741_s5 = inlined_call_operand.hbm [shape: f32[2,8,16], index: 5, kind: output, shape index: {}]  }
   0x1   :  { %11 = vsyncpa [#allocation6], 0  ;;  %s615_s18 = smov [#allocation4]   ;;  %s567_s22 = scalar_lea.hbm %s737_s1, 256 }
   0x2   :  { %s19_s19 = sshll.u32 %s615_s18, 4  ;;  %p568_p0 = scmp.ne.s32.totalorder %s737_s1, %s567_s22  ;;  %s20_s19 = int_to_ptr.vmem [resolvable:$true] %s19_s19 }
   0x3   :  { %p571_p1 = scmp.lt.u32.totalorder %s567_s22, %s737_s1 }
   0x5   :  { %p573_p2 = pnand %p571_p1, %p568_p0 }
   0x7   :  { %576 = shalt.err (!%p573_p2)
}
   0x8   :  { %s577_s27 = scalar_lea.vmem %s20_s19, 256  ;;  %p582_p4 = scmp.lt.s32.totalorder %s20_s19, %s20_s19 }
   0x9   :  { %p578_p3 = scmp.ne.s32.totalorder %s20_s19, %s577_s27  ;;  %p583_p5 = scmp.lt.s32.totalorder %s577_s27, %s577_s27 }
   0xb   :  { %p584_p6 = por %p583_p5, %p582_p4 }
   0xd   :  { %p585_p7 = pnand %p584_p6, %p578_p3 }
   0xf   :  { %588 = shalt.err (!%p585_p7)
}
  0x10   :  { %s616_s28 = smov 128   ;;  %s617_s29 = smov 8  }
  0x11   :  { %25 = dma.hbm_to_vmem [thread:$0]  %s737_s1, 256, %s20_s19, [#allocation5], %s616_s28, %s616_s28, %s617_s29  }
  0x12   :  { %611 = dma.done.wait [#allocation5], 256  }
  0x13   :  { %612 = vsyncadd [#allocation5], 4294967040  ;;  %vm39_vm0 = vcmask 31744   ;;  %v618_v0 = vmov 0.0   ;;  %v73_v1 = vld [vmem:[%s736_s0] sm:$0xff]  ;;  %s619_s9 = smov 4  }
  0x14   :  { %40 = vst.msk [vmem:[#allocation2] sm:$0xff] %vm39_vm0, %v618_v0  ;;  %41 = vst.msk [vmem:[#allocation2 + $0x8] sm:$0xff] %vm39_vm0, %v618_v0  ;;  %77 = vrot.lane.b32.xlu0 %v73_v1, %s619_s9  ;;  %v74_v2 = vld [vmem:[%s736_s0 + $0x8] sm:$0xff]  ;;  %vm83_vm1 = vcmask 162848   ;;  %v86_v4 = vld [vmem:[#allocation4] sm:$0xff]  ;;  %vm110_vm2 = vcmask 195584  }
  0x15   :  { %42 = vst.msk [vmem:[#allocation3] sm:$0xff] %vm39_vm0, %v618_v0  ;;  %43 = vst.msk [vmem:[#allocation3 + $0x8] sm:$0xff] %vm39_vm0, %v618_v0  ;;  %510 = vmatprep.mubr.msk.f32.mxu0 %vm110_vm2, %v86_v4  ;;  %s620_s11 = smov 126   ;;  %v621_v7 = vmov 0   ;;  %s622_s0 = smov 124   ;;  %v88_v9 = vld [vmem:[%s738_s2] sm:$0xff] }
  0x16   :  { %565 = vset.pattern.permute.xlu0 %v621_v7  ;;  %566 = vset.pattern.permute.xlu1 %v621_v7  ;;  %v87_v14 = vld [vmem:[#allocation4 + $0x8] sm:$0xff]  ;;  %v623_v26 = vmov 0.0|0.0   ;;  %vm624_vm3 = vmmov 0   ;;  %v91_v32 = vld [vmem:[%s740_s4] sm:$0xff]  ;;  %vm287_vm4 = vcmask 130048  }
  0x17   :  { %544 = vmatprep.subr.bf16.mxu1 %v623_v26  ;;  %519 = vmatprep.mubr.msk.f32.mxu1 %vm624_vm3, %v618_v0  ;;  %v89_v31 = vld [vmem:[%s738_s2 + $0x8] sm:$0xff]  ;;  %v90_v35 = vld [vmem:[%s739_s3] sm:$0xff]  ;;  %s625_s2 = smov [#allocation7]  }
  0x18   :  { %79 = vrot.lane.b32.xlu0 %v74_v2, %s619_s9  ;;  %s468_s3 = sshll.u32 %s625_s2, 4  ;;  %s469_s3 = int_to_ptr.vmem [resolvable:$true] %s468_s3 }
  0x19   :  { %s589_s4 = scalar_lea.vmem %s469_s3, 256  ;;  %p594_p9 = scmp.lt.s32.totalorder %s469_s3, %s469_s3 }
  0x1a   :  { %p590_p8 = scmp.ne.s32.totalorder %s469_s3, %s589_s4  ;;  %p595_p10 = scmp.lt.s32.totalorder %s589_s4, %s589_s4 }
  0x1c   :  { %p596_p11 = por %p595_p10, %p594_p9 }
  0x1e   :  { %p597_p12 = pnand %p596_p11, %p590_p8 }
  0x86   :  { %v78_v3 = vpop.permute.xlu0 %77 }
  0x87   :  { %84 = vst.msk [vmem:[#allocation2] sm:$0xff] %vm83_vm1, %v78_v3 }
  0x8a   :  { %v80_v5 = vpop.permute.xlu0 %79 }
  0x8b   :  { %85 = vst.msk [vmem:[#allocation2 + $0x8] sm:$0xff] %vm83_vm1, %v80_v5 }
  0x8e   :  { %v92_v6 = vld [vmem:[#allocation2] sm:$0xff] }
  0x8f   :  { %94 = vrot.lane.b32.xlu1 %v92_v6, %s620_s11 }
  0x92   :  { %v290_v8 = vld [vmem:[#allocation2 + $0x8] sm:$0xff] }
  0x93   :  { %292 = vrot.lane.b32.xlu0 %v290_v8, %s620_s11  ;;  %97 = vrot.lane.b32.xlu1 %v92_v6, %s622_s0 }
  0x97   :  { %295 = vrot.lane.b32.xlu1 %v290_v8, %s622_s0  ;;  %102 = vperm.xlu0 %565, %v88_v9  }
 0x101   :  { %v95_v10 = vpop.permute.xlu1 %94 }
 0x102   :  { %v540_v11 = vpack.c.bf16 %v95_v10, %v92_v6 }
 0x104   :  { %541 = vmatprep.subr.bf16.mxu0 %v540_v11 }
 0x105   :  { %v293_v12 = vpop.permute.xlu0 %292  ;;  %543 = vmatpush3.bf16.msra.mxu0 %v540_v11  ;;  %v98_v13 = vpop.permute.xlu1 %97 }
 0x106   :  { %508 = vmatprep.subr.mxu0 %v98_v13  ;;  %v547_v15 = vpack.c.bf16 %v293_v12, %v290_v8 }
 0x109   :  { %509 = vmatpush3.msra.mxu0 %v98_v13  ;;  %v296_v16 = vpop.permute.xlu1 %295 }
 0x10a   :  { %511 = vmatmul.mubr.msk.f32.vlgmr.msra.gmra.mrb[0].mxu0 %vm110_vm2, %v87_v14  ;;  %548 = vmatprep.subr.bf16.mxu0 %v547_v15 }
 0x10b   :  { %550 = vmatpush3.bf16.msra.mxu0 %v547_v15  ;;  %528 = vmatprep.mubr.msk.f32.mxu0 %vm110_vm2, %v86_v4 }
 0x10c   :  { %526 = vmatprep.subr.mxu0 %v296_v16 }
 0x10f   :  { %527 = vmatpush3.msra.mxu0 %v296_v16 }
 0x110   :  { %529 = vmatmul.mubr.msk.f32.vlgmr.msra.gmra.mrb[2].mxu0 %vm110_vm2, %v87_v14 }
 0x116   :  { %v103_v17 = vpop.permute.xlu0 %102 }
 0x1dd   :  { %v512_v18 = vpop.f32.mrb[0].mxu0 }
 0x1de   :  { %v183_v19 = vpop.f32.mrb[1].mxu0 }
 0x1df   :  { %v184_v20 = vadd.f32 %v183_v19, %v103_v17 }
 0x1e1   :  { %v192_v21 = vmax.f32 %v184_v20, 0.0 }
 0x1e3   :  { %194 = vrot.lane.b32.xlu1 %v192_v21, %s619_s9  ;;  %v530_v22 = vpop.f32.mrb[2].mxu0 }
 0x1e4   :  { %v364_v23 = vpop.f32.mrb[3].mxu0 }
 0x1e5   :  { %v365_v24 = vadd.f32 %v364_v23, %v103_v17 }
 0x1e7   :  { %v373_v25 = vmax.f32 %v365_v24, 0.0 }
 0x1e9   :  { %375 = vrot.lane.b32.xlu1 %v373_v25, %s619_s9 }
 0x255   :  { %v195_v27 = vpop.permute.xlu1 %194 }
 0x256   :  { %197 = vst.msk [vmem:[#allocation3] sm:$0xff] %vm83_vm1, %v195_v27 }
 0x25b   :  { %v376_v28 = vpop.permute.xlu1 %375 }
 0x25c   :  { %379 = vst.msk [vmem:[#allocation3 + $0x8] sm:$0xff] %vm83_vm1, %v376_v28 }
 0x25d   :  { %v198_v29 = vld [vmem:[#allocation3] sm:$0xff] }
 0x25e   :  { %203 = vrot.lane.b32.xlu1 %v198_v29, %s622_s0  ;;  %200 = vrot.lane.b32.xlu0 %v198_v29, %s620_s11 }
 0x263   :  { %v380_v30 = vld [vmem:[#allocation3 + $0x8] sm:$0xff] }
 0x264   :  { %385 = vrot.lane.b32.xlu1 %v380_v30, %s622_s0  ;;  %382 = vrot.lane.b32.xlu0 %v380_v30, %s620_s11 }
 0x268   :  { %107 = vperm.xlu1 %566, %v89_v31   ;;  %208 = vperm.xlu0 %565, %v91_v32  }
 0x2d0   :  { %v201_v33 = vpop.permute.xlu0 %200  ;;  %v204_v36 = vpop.permute.xlu1 %203 }
 0x2d1   :  { %v545_v34 = vpack.c.bf16 %v201_v33, %v198_v29 }
 0x2d3   :  { %546 = vmatpush3.bf16.msra.mxu1 %v545_v34 }
 0x2d4   :  { %517 = vmatprep.subr.mxu1 %v618_v0 }
 0x2d6   :  { %v383_v37 = vpop.permute.xlu0 %382  ;;  %v386_v39 = vpop.permute.xlu1 %385 }
 0x2d7   :  { %v552_v38 = vpack.c.bf16 %v383_v37, %v380_v30  ;;  %518 = vmatpush3.msra.mxu1 %v204_v36 }
 0x2d8   :  { %520 = vmatmul.mubr.msk.f32.vlgmr.msra.gmra.mrb[0].mxu1 %vm110_vm2, %v90_v35  ;;  %551 = vmatprep.subr.bf16.mxu1 %v623_v26 }
 0x2d9   :  { %553 = vmatpush3.bf16.msra.mxu1 %v552_v38  ;;  %537 = vmatprep.mubr.msk.f32.mxu1 %vm624_vm3, %v618_v0 }
 0x2da   :  { %535 = vmatprep.subr.mxu1 %v618_v0 }
 0x2dd   :  { %536 = vmatpush3.msra.mxu1 %v386_v39 }
 0x2de   :  { %538 = vmatmul.mubr.msk.f32.vlgmr.msra.gmra.mrb[2].mxu1 %vm110_vm2, %v90_v35 }
 0x2e7   :  { %v209_v40 = vpop.permute.xlu0 %208  ;;  %v108_v41 = vpop.permute.xlu1 %107 }
 0x2e8   :  { %v189_v45 = vadd.f32 %v512_v18, %v108_v41  ;;  %v370_v52 = vadd.f32 %v530_v22, %v108_v41 }
 0x3ab   :  { %v280_v42 = vpop.f32.mrb[0].mxu1 }
 0x3ac   :  { %v281_v43 = vadd.f32 %v280_v42, %v209_v40  ;;  %v521_v44 = vpop.f32.mrb[1].mxu1 }
 0x3ae   :  { %v284_v46 = vmax.f32 %v281_v43, 0.0 }
 0x3b0   :  { %v285_v47 = vadd.f32 %v284_v46, %v189_v45 }
 0x3b1   :  { %v454_v48 = vpop.f32.mrb[2].mxu1 }
 0x3b2   :  { %v286_v49 = vmax.f32 %v285_v47, 0.0  ;;  %v455_v50 = vadd.f32 %v454_v48, %v209_v40  ;;  %v539_v51 = vpop.f32.mrb[3].mxu1 }
 0x3b4   :  { %v458_v53 = vmax.f32 %v455_v50, 0.0  ;;  %288 = vst.msk [vmem:[#allocation7] sm:$0xff] %vm287_vm4, %v286_v49 }
 0x3b6   :  { %v459_v54 = vadd.f32 %v458_v53, %v370_v52 }
 0x3b8   :  { %v460_v55 = vmax.f32 %v459_v54, 0.0 }
 0x3ba   :  { %462 = vst.msk [vmem:[#allocation7 + $0x8] sm:$0xff] %vm287_vm4, %v460_v55 }
 0x3bb   :  { %600 = shalt.err (!%p597_p12)
}
 0x3bc   :  { %s601_s22 = scalar_lea.hbm %s741_s5, 256 }
 0x3bd   :  { %p602_p13 = scmp.ne.s32.totalorder %s741_s5, %s601_s22  ;;  %p605_p0 = scmp.lt.u32.totalorder %s601_s22, %s741_s5 }
 0x3bf   :  { %p607_p1 = pnand %p605_p0, %p602_p13 }
 0x3c1   :  { %610 = shalt.err (!%p607_p1)
}
 0x3c2   :  { %474 = dma.vmem_to_hbm [thread:$0]  %s469_s3, 256, %s741_s5, [#allocation6], %s616_s28, %s616_s28, %s617_s29  }
 0x3c3   :  { %613 = dma.done.wait [#allocation6], 256  }
 0x3c4   :  { %614 = vsyncadd [#allocation6], 4294967040 }
 0x3c5   :  { %478 = vsyncpa [#allocation5], 1 }
 0x3c6   :  { %479 = vsyncpa [#allocation6], 1 }

</bundles_post_ra>
